<compile_context>
chip_gen: v7x
topology: tpu7x:2x2x1
jax: 0.10.0
libtpu: 0.0.40
codegen_flags: <defaults>
</compile_context>

<pallas_src>
import functools

import jax
import jax.numpy as jnp
from jax import lax
from jax.experimental import pallas as pl
from jax.experimental.pallas import tpu as pltpu


def _embedding_kernel(x_ref, w1_ref, w2_ref, b2_ref, o_ref, *,
                      normalize: bool, eps: float):
    # base_model(x): Linear(D_in -> H).  bf16 MXU operands, f32 accumulation.
    h = jnp.dot(x_ref[...], w1_ref[...], preferred_element_type=jnp.float32)

    # embedding_layer(h): Linear(H -> D_emb).  b1 was folded into b2 in the
    # wrapper (b2_eff = b1 @ W2 + b2), so there is no per-tile b1 add here.
    e = jnp.dot(h.astype(w2_ref.dtype), w2_ref[...],
                preferred_element_type=jnp.float32)
    e = e + b2_ref[...]

    if normalize:
        # torch.nn.functional.normalize(e, p=2, dim=1): e / max(||e||_2, eps)
        #   == e * rsqrt(max(sum(e^2), eps^2))
        # rsqrt on a (block_b, 1) column runs on the EUP (its own bundle slot);
        # the scale is a cheap VPU multiply, so the epilogue hides under the
        # output DMA even on v5e.
        sumsq = jnp.sum(e * e, axis=-1, keepdims=True)
        inv = lax.rsqrt(jnp.maximum(sumsq, eps * eps))
        e = e * inv

    o_ref[...] = e.astype(o_ref.dtype)


def _round_up(x: int, m: int) -> int:
    return ((x + m - 1) // m) * m


def _choose_block_b(B: int, max_block: int = 2048) -> int:
    """Largest batch tile (amortizes per-grid-step overhead) up to 2048 rows,
    but keep >= 2 grid steps when B allows so the "parallel" batch axis can be
    sharded across v7x's two TensorCores.  2048-row tiles are ~3 MiB
    double-buffered -> well inside the scoped-VMEM defaults on v5e/v6e/v7x."""
    if B <= 16:
        return _round_up(max(B, 1), 16)
    return min(max_block, _round_up(pl.cdiv(B, 2), 16))


def embedding_model(x, w1, b1, w2, b2, *, normalize=False, block_b=None,
                    eps=1e-12, out_dtype=jnp.float32):
    """Fused EmbeddingModel forward.
       x: (B, D_in); w1: (D_in, H); b1: (H,) or (1, H); w2: (H, D_emb);
       b2: (D_emb,) or (1, D_emb)  ->  (B, D_emb) in out_dtype."""
    B, D_in = x.shape
    H = w1.shape[1]
    D_emb = w2.shape[1]

    # bf16 MXU operands, f32 accumulation.
    x_bf = x.astype(jnp.bfloat16)
    w1_bf = w1.astype(jnp.bfloat16)
    w2_bf = w2.astype(jnp.bfloat16)

    # Fold the first-layer bias through the second layer:
    #   (h + b1) @ W2 + b2 == h @ W2 + (b1 @ W2 + b2)
    b1f = jnp.asarray(b1, jnp.float32).reshape(1, H)
    b2f = jnp.asarray(b2, jnp.float32).reshape(1, D_emb)
    b2_eff = b1f @ w2_bf.astype(jnp.float32) + b2f          # (1, D_emb), f32

    if block_b is None:
        block_b = _choose_block_b(B)
    block_b = max(16, _round_up(min(int(block_b), max(B, 1)), 16))

    # Pad ragged batches to a tile multiple (padded rows are zeros; under
    # normalize their norm clamps at eps, so no NaNs), slice the output back.
    B_pad = _round_up(B, block_b)
    if B_pad != B:
        x_bf = jnp.pad(x_bf, ((0, B_pad - B), (0, 0)))

    grid = (B_pad // block_b,)

    out_itemsize = jnp.dtype(out_dtype).itemsize
    flops = 2 * B_pad * D_in * H + 2 * B_pad * H * D_emb
    if normalize:
        flops += 3 * B_pad * D_emb
    bytes_accessed = (B_pad * D_in * 2 + D_in * H * 2 + H * D_emb * 2
                      + D_emb * 4 + B_pad * D_emb * out_itemsize)
    cost = pl.CostEstimate(flops=flops,
                           transcendentals=(B_pad if normalize else 0),
                           bytes_accessed=bytes_accessed)

    grid_spec = pl.GridSpec(
        grid=grid,
        in_specs=[
            # one batch tile per grid step
            pl.BlockSpec((block_b, D_in), lambda i: (i, 0)),
            # weights / folded bias resident across the (parallel) batch axis
            pl.BlockSpec((D_in, H), lambda i: (0, 0)),
            pl.BlockSpec((H, D_emb), lambda i: (0, 0)),
            pl.BlockSpec((1, D_emb), lambda i: (0, 0)),
        ],
        out_specs=pl.BlockSpec((block_b, D_emb), lambda i: (i, 0)),
    )

    kernel = functools.partial(_embedding_kernel, normalize=normalize, eps=eps)

    out = pl.pallas_call(
        kernel,
        out_shape=jax.ShapeDtypeStruct((B_pad, D_emb), out_dtype),
        grid_spec=grid_spec,
        compiler_params=pltpu.CompilerParams(
            # batch tiles are independent -> shard across TCs on v7x;
            # tiles stay under every generation's scoped-VMEM default, so no
            # explicit vmem_limit_bytes is needed.
            dimension_semantics=("parallel",),
        ),
        cost_estimate=cost,
    )(x_bf, w1_bf, w2_bf, b2_eff)

    if B_pad != B:
        out = out[:B]
    return out


def _reference(x, w1, b1, w2, b2, normalize, eps=1e-12):
    """Pure-JAX reference on the exact same dtype path as the kernel
    (bf16 operands, f32 accumulation, folded first-layer bias)."""
    x_bf = x.astype(jnp.bfloat16)
    w1_bf = w1.astype(jnp.bfloat16)
    w2_bf = w2.astype(jnp.bfloat16)
    b2_eff = (jnp.asarray(b1, jnp.float32).reshape(1, -1)
              @ w2_bf.astype(jnp.float32)
              + jnp.asarray(b2, jnp.float32).reshape(1, -1))
    h = jnp.dot(x_bf, w1_bf, preferred_element_type=jnp.float32)
    e = jnp.dot(h.astype(jnp.bfloat16), w2_bf,
                preferred_element_type=jnp.float32) + b2_eff
    if normalize:
        norm = jnp.sqrt(jnp.sum(e * e, axis=-1, keepdims=True))
        e = e / jnp.maximum(norm, eps)
    return e


if __name__ == "__main__":
    # MXU/lane-aligned shapes: embedding_dimension=128 is the module default.
    B, D_in, H, D_emb = 256, 128, 128, 128

    key = jax.random.PRNGKey(0)
    kx, kw1, kb1, kw2, kb2 = jax.random.split(key, 5)

    x = jax.random.normal(kx, (B, D_in), dtype=jnp.float32)
    # synthetic "base_model" = Linear(D_in -> H); embedding_layer = Linear(H -> D_emb)
    w1 = jax.random.normal(kw1, (D_in, H), dtype=jnp.float32) * 0.05
    b1 = jax.random.normal(kb1, (H,), dtype=jnp.float32) * 0.05
    w2 = jax.random.normal(kw2, (H, D_emb), dtype=jnp.float32) * 0.05
    b2 = jax.random.normal(kb2, (D_emb,), dtype=jnp.float32) * 0.05

    for normalize in (False, True):
        out = embedding_model(x, w1, b1, w2, b2, normalize=normalize)
        out = jax.block_until_ready(out)
        ref = _reference(x, w1, b1, w2, b2, normalize)
        assert out.shape == (B, D_emb)
        assert jnp.allclose(out, ref, atol=2e-3, rtol=2e-3), (
            f"mismatch (normalize={normalize}): "
            f"max abs err {jnp.max(jnp.abs(out - ref))}")

    # Ragged batch exercises the padding path (B=100 -> padded, sliced back).
    out_r = embedding_model(x[:100], w1, b1, w2, b2, normalize=True)
    out_r = jax.block_until_ready(out_r)
    ref_r = _reference(x[:100], w1, b1, w2, b2, True)
    assert out_r.shape == (100, D_emb)
    assert jnp.allclose(out_r, ref_r, atol=2e-3, rtol=2e-3), (
        f"ragged mismatch: max abs err {jnp.max(jnp.abs(out_r - ref_r))}")

    print("KERNEL_OK")
</pallas_src>

<mosaic_0001>
module attributes {stable_mosaic.version = 11 : i64} {
  func.func @_embedding_kernel(%arg0: i32, %arg1: memref<128x128xbf16, #tpu.memory_space<vmem>>, %arg2: memref<128x128xbf16, #tpu.memory_space<vmem>>, %arg3: memref<128x128xbf16, #tpu.memory_space<vmem>>, %arg4: memref<1x128xf32, #tpu.memory_space<vmem>>, %arg5: memref<128x128xf32, #tpu.memory_space<vmem>>) attributes {dimension_semantics = [#tpu.dimension_semantics<parallel>], iteration_bounds = array<i64: 2>, scalar_prefetch = 0 : i64, scratch_operands = 0 : i64, tpu.core_type = #tpu.core_type<tc>, window_params = [{transform_indices = @transform_0, window_bounds = array<i64: 128, 128>}, {pipeline_mode = #tpu.pipeline_mode<synchronous>, transform_indices = @transform_1, window_bounds = array<i64: 128, 128>}, {pipeline_mode = #tpu.pipeline_mode<synchronous>, transform_indices = @transform_2, window_bounds = array<i64: 128, 128>}, {pipeline_mode = #tpu.pipeline_mode<synchronous>, transform_indices = @transform_3, window_bounds = array<i64: 1, 128>}, {transform_indices = @transform_4, window_bounds = array<i64: 128, 128>}]} {
    %c0 = arith.constant 0 : index
    %c0_0 = arith.constant 0 : index
    %0 = vector.load %arg1[%c0, %c0_0] : memref<128x128xbf16, #tpu.memory_space<vmem>>, vector<128x128xbf16>
    %c0_1 = arith.constant 0 : index
    %c0_2 = arith.constant 0 : index
    %1 = vector.load %arg2[%c0_1, %c0_2] : memref<128x128xbf16, #tpu.memory_space<vmem>>, vector<128x128xbf16>
    %cst = arith.constant dense<0.000000e+00> : vector<128x128xf32>
    %2 = tpu.matmul %0, %1, %cst {dimension_numbers = #tpu.dot_dimension_numbers<[1], [0], [0], [1], [0, 0, 1, 1], [], []>} : vector<128x128xbf16>, vector<128x128xbf16>, vector<128x128xf32> -> vector<128x128xf32>
    %3 = arith.truncf %2 : vector<128x128xf32> to vector<128x128xbf16>
    %c0_3 = arith.constant 0 : index
    %c0_4 = arith.constant 0 : index
    %4 = vector.load %arg3[%c0_3, %c0_4] : memref<128x128xbf16, #tpu.memory_space<vmem>>, vector<128x128xbf16>
    %cst_5 = arith.constant dense<0.000000e+00> : vector<128x128xf32>
    %5 = tpu.matmul %3, %4, %cst_5 {dimension_numbers = #tpu.dot_dimension_numbers<[1], [0], [0], [1], [0, 0, 1, 1], [], []>} : vector<128x128xbf16>, vector<128x128xbf16>, vector<128x128xf32> -> vector<128x128xf32>
    %c0_6 = arith.constant 0 : index
    %c0_7 = arith.constant 0 : index
    %6 = vector.load %arg4[%c0_6, %c0_7] : memref<1x128xf32, #tpu.memory_space<vmem>>, vector<1x128xf32>
    %7 = vector.broadcast %6 : vector<1x128xf32> to vector<128x128xf32>
    %8 = arith.addf %5, %7 : vector<128x128xf32>
    %c0_8 = arith.constant 0 : index
    %c0_9 = arith.constant 0 : index
    %9 = vector.load %arg5[%c0_8, %c0_9] : memref<128x128xf32, #tpu.memory_space<vmem>>, vector<128x128xf32>
    tpu.vector_store %arg5[%c0_8, %c0_9], %8 {strides = array<i32>} : memref<128x128xf32, #tpu.memory_space<vmem>>, vector<128x128xf32>,
    return
  }
  func.func @transform_0(%arg0: i32) -> (i32, i32) {
    %c0_i32 = arith.constant 0 : i32
    %c0_i32_0 = arith.constant 0 : i32
    return %arg0, %c0_i32 : i32, i32
  }
  func.func @transform_1(%arg0: i32) -> (i32, i32) {
    %c0_i32 = arith.constant 0 : i32
    %c0_i32_0 = arith.constant 0 : i32
    %c0_i32_1 = arith.constant 0 : i32
    return %c0_i32, %c0_i32_0 : i32, i32
  }
  func.func @transform_2(%arg0: i32) -> (i32, i32) {
    %c0_i32 = arith.constant 0 : i32
    %c0_i32_0 = arith.constant 0 : i32
    %c0_i32_1 = arith.constant 0 : i32
    return %c0_i32, %c0_i32_0 : i32, i32
  }
  func.func @transform_3(%arg0: i32) -> (i32, i32) {
    %c0_i32 = arith.constant 0 : i32
    %c0_i32_0 = arith.constant 0 : i32
    %c0_i32_1 = arith.constant 0 : i32
    return %c0_i32, %c0_i32_0 : i32, i32
  }
  func.func @transform_4(%arg0: i32) -> (i32, i32) {
    %c0_i32 = arith.constant 0 : i32
    %c0_i32_0 = arith.constant 0 : i32
    return %arg0, %c0_i32 : i32, i32
  }
}

</mosaic_0001>

<bundles_post_ra>
// kernel: tpu_custom_call.1
= control target key start
LH: loop header
LB: loop body
LE: loop exit
PB: predicated region body
PF: predicated region fallthrough
CT: control target
= control target key end

     0   :  { %9 = vsyncpa [#allocation3], 0  ;;  %s1474_s0 = inlined_call_operand.hbm [shape: bf16[256,128], index: 0, kind: input, shape index: {}]   ;;  %s1475_s1 = inlined_call_operand.hbm [shape: bf16[128,128], index: 1, kind: input, shape index: {}]   ;;  %s1476_s2 = inlined_call_operand.hbm [shape: bf16[128,128], index: 2, kind: input, shape index: {}]   ;;  %s1477_s3 = inlined_call_operand.vmem [shape: f32[1,128], index: 3, kind: input, shape index: {}]   ;;  %s1478_s4 = inlined_call_operand.hbm [shape: f32[256,128], index: 4, kind: output, shape index: {}]  }
   0x1   :  { %11 = vsyncpa [#allocation3 + $0x1], 0 }
   0x2   :  { %12 = vsyncpa [#allocation6], 0 }
   0x3   :  { %13 = vsyncpa [#allocation4], 0 }
   0x4   :  { %15 = vsyncpa [#allocation4 + $0x1], 0  ;;  %s1198_s15 = smov 0   ;;  %s1200_s16 = smov 0  }
   0x5   :  { %s1202_s17 = smov 0   ;;  %s1204_s18 = smov 0  }
   0x6 LB: > { %s1219_s19 = sadd.s32 4294967295, %s1163_s18   ;;  %s771_s20 = sadd.s32 4294967294, %s1163_s18   ;;  %s1163_s18 = sphi %s1204_s18, %s1498_s18   ;;  %s1159_s17 = sphi %s1202_s17, %s1497_s17   ;;  %s1155_s16 = sphi %s1200_s16, %s1496_s16   ;;  %s1151_s15 = sphi %s1198_s15, %s1495_s15  }
   0x7   : > { %p41_p0 = scmp.ne.s32.totalorder %s1155_s16, %s1151_s15  ;;  %p1479_p1 = scmp.eq.s32.totalorder %s1219_s19, 0 }
   0x8   : > { %p134_p3 = scmp.eq.s32.totalorder %s771_s20, 1  ;;  %p772_p5 = scmp.ge.s32.totalorder %s1163_s18, 1 }
   0x9   : > { %p1228_p4 = por %p1479_p1, %p41_p0  ;;  %p141_p7 = scmp.lt.s32.totalorder %s1163_s18, 3 }
   0xa   : > { %p1233_p6 = por %p134_p3, %p41_p0  ;;  %s1165_s24 = smov [#allocation5]  }
   0xb   : > { %s1482_s21 = scalar_select %p1228_p4, 1, 0 }
   0xc   : > { %s1483_s22 = scalar_select %p1233_p6, 1, 0 }
   0xd   : > { %p1238_p8 = pnand %p772_p5, %p141_p7  ;;  %s153_s25 = sshll.u32 %s1165_s24, 4  ;;  %s1242_s25 = int_to_ptr.vmem [resolvable:$true] %s153_s25 }
   0xe   : > { %s1166_s27 = smov [#allocation7]   ;;  %s1007_s5 = scalar_lea.hbm %s1475_s1, 1024 }
   0xf   : > { %p924_p9 = pneg %p1238_p8  ;;  %s166_s28 = sshll.u32 %s1166_s27, 4  ;;  %s1253_s28 = int_to_ptr.vmem [resolvable:$true] %s166_s28 }
  0x10   : > { %p1008_p12 = scmp.ne.s32.totalorder %s1475_s1, %s1007_s5  ;;  %p1014_p5 = scmp.lt.u32.totalorder %s1007_s5, %s1475_s1 }
  0x11   : > { %p1249_p11 = pnand %p924_p9, %p1479_p1 }
  0x13   : > { %p1009_p13 = pneg %p1249_p11 }
  0x15   : > { %p1010_p0 = pnand %p1009_p13, %p1008_p12 }
  0x17   : > { %p1011_p3 = pneg %p1010_p0 }
  0x19   : > { %p1016_p7 = pnand %p1014_p5, %p1011_p3 }
  0x1b   : > { %1019 = shalt.err (!%p1016_p7)
}
  0x1c   : > { %s1020_s10 = scalar_lea.vmem %s1242_s25, 1024  ;;  %p1028_p2 = scmp.lt.s32.totalorder %s1242_s25, %s1242_s25 }
  0x1d   : > { %p1021_p9 = scmp.ne.s32.totalorder %s1242_s25, %s1020_s10  ;;  %p1029_p12 = scmp.lt.s32.totalorder %s1020_s10, %s1020_s10 }
  0x1f   : > { %p1023_p10 = pnand %p1021_p9, %p1009_p13  ;;  %p1030_p0 = por %p1029_p12, %p1028_p2 }
  0x21   : > { %p1024_p1 = pneg %p1023_p10 }
  0x23   : > { %p1031_p6 = pnand %p1030_p0, %p1024_p1 }
  0x25   : > { %1034 = shalt.err (!%p1031_p6)
}
  0x26   : > { %s1167_s11 = smov 64   ;;  %s1168_s12 = smov 4  }
  0x27   : > { %927 = dma.hbm_to_vmem [thread:$0]  (!%p1249_p11), %s1475_s1, 1024, %s1242_s25, [#allocation6], %s1167_s11, %s1167_s11, %s1168_s12  }
  0x28   : > { %s1035_s27 = scalar_lea.hbm %s1476_s2, 1024 }
  0x29   : > { %p1036_p1 = scmp.ne.s32.totalorder %s1476_s2, %s1035_s27  ;;  %p1042_p10 = scmp.lt.u32.totalorder %s1035_s27, %s1476_s2 }
  0x2b   : > { %p1038_p2 = pnand %p1036_p1, %p1009_p13 }
  0x2d   : > { %p1039_p6 = pneg %p1038_p2 }
  0x2f   : > { %p1044_p3 = pnand %p1042_p10, %p1039_p6 }
  0x31   : > { %1047 = shalt.err (!%p1044_p3)
}
  0x32   : > { %s1048_s25 = scalar_lea.vmem %s1253_s28, 1024  ;;  %p1056_p12 = scmp.lt.s32.totalorder %s1253_s28, %s1253_s28 }
  0x33   : > { %p1049_p5 = scmp.ne.s32.totalorder %s1253_s28, %s1048_s25  ;;  %p1057_p0 = scmp.lt.s32.totalorder %s1048_s25, %s1048_s25 }
  0x35   : > { %p1051_p7 = pnand %p1049_p5, %p1009_p13  ;;  %p1058_p1 = por %p1057_p0, %p1056_p12 }
  0x37   : > { %p1052_p9 = pneg %p1051_p7 }
  0x39   : > { %p1059_p2 = pnand %p1058_p1, %p1052_p9 }
  0x3b   : > { %1062 = shalt.err (!%p1059_p2)
}
  0x3c   : > { %930 = dma.hbm_to_vmem [thread:$0]  (!%p1249_p11), %s1476_s2, 1024, %s1253_s28, [#allocation6], %s1167_s11, %s1167_s11, %s1168_s12  }
  0x3d   : > { %s1314_s26 = sadd.s32 1, %s1163_s18   ;;  %s28_s9 = sadd.s32 1, %s1159_s17 }
  0x3e   : > { %s25_s10 = ssub.s32 %s1163_s18, %s1314_s26  ;;  %p35_p13 = scmp.ne.s32.totalorder %s1159_s17, %s1155_s16 }
  0x3f   : > { %p26_p6 = scmp.eq.s32.totalorder %s25_s10, 0  ;;  %p36_p10 = scmp.eq.s32.totalorder %s1163_s18, 0 }
  0x40   : > { %p1486_p3 = scmp.eq.s32.totalorder %s1219_s19, 1  ;;  %p941_p7 = scmp.lt.s32.totalorder %s1163_s18, 2 }
  0x41   : > { %s1330_s14 = scalar_select %p26_p6, %s1159_s17, %s28_s9  }
  0x42   : > { %p1324_p5 = por %p1486_p3, %p35_p13  ;;  %p37_p9 = por %p36_p10, %p35_p13 }
  0x43   : > { %s183_s20 = sand.u32 1, %s1159_s17   ;;  %s814_s28 = sshll.u32 %s1163_s18, 10 }
  0x44   : > { %s1487_s13 = scalar_select %p1324_p5, 1, 0 }
  0x45   : > { %s776_s24 = sshll.u32 %s183_s20, 6  ;;  %s1337_s30 = scalar_lea.hbm %s1474_s0, %s814_s28 }
  0x46   : > { %s187_s5 = scalar_lea.vmem [#allocation2], %s776_s24  ;;  %p1341_p11 = pnand %p941_p7, %p37_p9 }
  0x47   : > { %s194_s6 = sshll.u32 %s187_s5, 4  ;;  %s1345_s7 = scalar_lea.sflag [#allocation3], %s183_s20  ;;  %s1339_s6 = int_to_ptr.vmem [resolvable:$true] %s194_s6 }
  0x48   : > { %s1063_s8 = scalar_lea.hbm %s1337_s30, 1024  ;;  %p1065_p0 = pneg %p1341_p11 }
  0x49   : > { %p1064_p12 = scmp.ne.s32.totalorder %s1337_s30, %s1063_s8  ;;  %s1068_s24 = scalar_lea.hbm %s1474_s0, 2048 }
  0x4a   : > { %p1069_p13 = scmp.lt.u32.totalorder %s1337_s30, %s1474_s0  ;;  %p1070_p6 = scmp.lt.u32.totalorder %s1068_s24, %s1063_s8 }
  0x4b   : > { %p1066_p1 = pnand %p1065_p0, %p1064_p12  ;;  %p1072_p3 = scmp.lt.u32.totalorder %s1063_s8, %s1337_s30 }
  0x4c   : > { %p1071_p10 = por %p1070_p6, %p1069_p13 }
  0x4d   : > { %p1067_p2 = pneg %p1066_p1 }
  0x4e   : > { %p1073_p7 = por %p1072_p3, %p1071_p10 }
  0x50   : > { %p1074_p9 = pnand %p1073_p7, %p1067_p2 }
  0x52   : > { %1077 = shalt.err (!%p1074_p9)
}
  0x53   : > { %s1078_s20 = scalar_lea.vmem %s1339_s6, 1024  ;;  %s1169_s29 = smov [#allocation2]  }
  0x54   : > { %p1079_p12 = scmp.ne.s32.totalorder %s1339_s6, %s1078_s20  ;;  %s1083_s5 = sshll.u32 %s1169_s29, 4  ;;  %s1084_s5 = int_to_ptr.vmem [resolvable:$false] %s1083_s5 }
  0x55   : > { %s1085_s9 = scalar_lea.vmem %s1084_s5, 2048  ;;  %p1086_p4 = scmp.lt.s32.totalorder %s1339_s6, %s1084_s5 }
  0x56   : > { %p1081_p1 = pnand %p1079_p12, %p1065_p0  ;;  %p1087_p13 = scmp.lt.s32.totalorder %s1085_s9, %s1078_s20 }
  0x58   : > { %p1082_p5 = pneg %p1081_p1  ;;  %p1088_p6 = por %p1087_p13, %p1086_p4 }
  0x5a   : > { %p1089_p10 = pnand %p1088_p6, %p1082_p5 }
  0x5c   : > { %1092 = shalt.err (!%p1089_p10)
}
  0x5d   : > { %934 = dma.hbm_to_vmem [thread:$0]  (!%p1341_p11), %s1337_s30, 1024, %s1339_s6, %s1345_s7, %s1167_s11, %s1167_s11, %s1168_s12  }
  0x5e   : > { %206 = sbr.rel (%p1238_p8) target bundleno = 612 (0x264), region = 36  ;;  %s1379_s8 = sand.u32 (!%p1238_p8), 1, %s1155_s16  }
  0x5f   : > { %s780_s10 = sshll.u32 (!%p1238_p8), %s1379_s8, 6  ;;  %s209_s24 = scalar_lea.sflag (!%p1238_p8), [#allocation3], %s1379_s8 }
  0x60   : > { %s1383_s28 = scalar_lea.vmem (!%p1238_p8), [#allocation2], %s780_s10  ;;  %p1489_p4 = scmp.ne.s32.totalorder (!%p1238_p8), %s1482_s21, 0 }
  0x65   : > { %1138 = dma.done.wait (%p1489_p4), %s209_s24, 1024  }
  0x66   : > { %1140 = vsyncadd (%p1489_p4), %s209_s24, 4294966272  ;;  %p1490_p5 = scmp.eq.s32.totalorder %s1219_s19, 0 }
  0x68   : > { %1142 = dma.done.wait (%p1490_p5), [#allocation6], 2048   ;;  %p1491_p8 = pmov %p1490_p5 }
  0x69   : > { %v983_v0 = vld [vmem:[#allocation5] sm:$0xff]   ;;  %v984_v1 = vld [vmem:[#allocation5 + $0x8] sm:$0xff]   ;;  %v985_v2 = vld [vmem:[#allocation5 + $0x10] sm:$0xff]   ;;  %s783_s21 = sshll.u32 %s1379_s8, 7  ;;  %s815_s30 = sshll.u32 %s1219_s19, 11 }
  0x6a   : > { %1144 = vsyncadd (%p1491_p8), [#allocation6], 4294965248  ;;  %848 = vmatprep.subr.bf16.mxu0 %v983_v0  ;;  %v986_v3 = vld [vmem:[#allocation5 + $0x18] sm:$0xff]   ;;  %v991_v4 = vld [vmem:[%s1383_s28] sm:$0xff]   ;;  %s1405_s12 = scalar_lea.vmem [#allocation8], %s783_s21  ;;  %s1425_s27 = scalar_lea.hbm %s1478_s4, %s815_s30 }
  0x6b   : > { %849 = vmatpush3.bf16.msra.mxu0 %v983_v0  ;;  %864 = vmatprep.mubr.bf16.mxu0 %v991_v4  ;;  %v987_v5 = vld [vmem:[#allocation5 + $0x20] sm:$0xff]   ;;  %v988_v6 = vld [vmem:[#allocation5 + $0x28] sm:$0xff]   ;;  %v989_v9 = vld [vmem:[#allocation5 + $0x30] sm:$0xff]   ;;  %s679_s6 = sshll.u32 %s1405_s12, 4  ;;  %s666_s19 = scalar_lea.sflag [#allocation4], %s1379_s8  ;;  %s1427_s6 = int_to_ptr.vmem [resolvable:$true] %s679_s6 }
  0x6c   : > { %850 = vmatprep.subr.bf16.mxu0 %v984_v1  ;;  %v999_v7 = vld [vmem:[#allocation7] sm:$0xff]   ;;  %v1000_v8 = vld [vmem:[#allocation7 + $0x8] sm:$0xff]   ;;  %v1001_v10 = vld [vmem:[#allocation7 + $0x10] sm:$0xff]   ;;  %s1093_s20 = scalar_lea.vmem %s1427_s6, 2048  ;;  %p1492_p0 = scmp.ne.s32.totalorder %s1487_s13, 0 }
  0x6d   : > { %880 = vmatprep.subr.bf16.mxu1 %v999_v7  ;;  %v990_v11 = vld [vmem:[#allocation5 + $0x38] sm:$0xff]   ;;  %v1003_v13 = vld [vmem:[#allocation7 + $0x20] sm:$0xff]   ;;  %v992_v14 = vld [vmem:[%s1383_s28 + $0x8] sm:$0xff]   ;;  %p1094_p11 = scmp.ne.s32.totalorder %s1427_s6, %s1093_s20  ;;  %s1170_s29 = smov [#allocation8]  }
  0x6e   : > { %881 = vmatpush3.bf16.msra.mxu1 %v999_v7  ;;  %v1002_v12 = vld [vmem:[#allocation7 + $0x18] sm:$0xff]   ;;  %v993_v15 = vld [vmem:[%s1383_s28 + $0x10] sm:$0xff]   ;;  %v1004_v16 = vld [vmem:[#allocation7 + $0x28] sm:$0xff]   ;;  %s1097_s5 = sshll.u32 %s1170_s29, 4  ;;  %s1098_s5 = int_to_ptr.vmem [resolvable:$false] %s1097_s5 }
  0x6f   : > { %851 = vmatpush3.bf16.msra.mxu0 %v984_v1  ;;  %882 = vmatprep.subr.bf16.mxu1 %v1000_v8  ;;  %v1005_v17 = vld [vmem:[#allocation7 + $0x30] sm:$0xff]   ;;  %v994_v18 = vld [vmem:[%s1383_s28 + $0x18] sm:$0xff]   ;;  %v995_v19 = vld [vmem:[%s1383_s28 + $0x20] sm:$0xff]   ;;  %p1095_p2 = pnand %p1094_p11, %p1492_p0  ;;  %s1099_s9 = scalar_lea.vmem %s1098_s5, 4096 }
  0x70   : > { %852 = vmatprep.subr.bf16.mxu0 %v985_v2  ;;  %v996_v20 = vld [vmem:[%s1383_s28 + $0x28] sm:$0xff]   ;;  %v997_v21 = vld [vmem:[%s1383_s28 + $0x30] sm:$0xff]   ;;  %v998_v22 = vld [vmem:[%s1383_s28 + $0x38] sm:$0xff]   ;;  %p1100_p7 = scmp.lt.s32.totalorder %s1427_s6, %s1098_s5  ;;  %p1101_p9 = scmp.lt.s32.totalorder %s1099_s9, %s1093_s20 }
  0x71   : > { %v1006_v23 = vld [vmem:[#allocation7 + $0x38] sm:$0xff]   ;;  %v800_v48 = vld [vmem:[%s1477_s3] ss:$0 sm:$0xff]  ;;  %p1096_p3 = pneg %p1095_p2 }
  0x72   : > { %883 = vmatpush3.bf16.msra.mxu1 %v1000_v8  ;;  %p1102_p12 = por %p1101_p9, %p1100_p7 }
  0x73   : > { %853 = vmatpush3.bf16.msra.mxu0 %v985_v2  ;;  %884 = vmatprep.subr.bf16.mxu1 %v1001_v10 }
  0x74   : > { %854 = vmatprep.subr.bf16.mxu0 %v986_v3  ;;  %p1103_p1 = pnand %p1102_p12, %p1096_p3 }
  0x76   : > { %885 = vmatpush3.bf16.msra.mxu1 %v1001_v10 }
  0x77   : > { %855 = vmatpush3.bf16.msra.mxu0 %v986_v3  ;;  %886 = vmatprep.subr.bf16.mxu1 %v1002_v12 }
  0x78   : > { %856 = vmatprep.subr.bf16.mxu0 %v987_v5 }
  0x7a   : > { %887 = vmatpush3.bf16.msra.mxu1 %v1002_v12 }
  0x7b   : > { %857 = vmatpush3.bf16.msra.mxu0 %v987_v5  ;;  %888 = vmatprep.subr.bf16.mxu1 %v1003_v13 }
  0x7c   : > { %858 = vmatprep.subr.bf16.mxu0 %v988_v6 }
  0x7e   : > { %889 = vmatpush3.bf16.msra.mxu1 %v1003_v13 }
  0x7f   : > { %859 = vmatpush3.bf16.msra.mxu0 %v988_v6  ;;  %890 = vmatprep.subr.bf16.mxu1 %v1004_v16 }
  0x80   : > { %860 = vmatprep.subr.bf16.mxu0 %v989_v9 }
  0x82   : > { %891 = vmatpush3.bf16.msra.mxu1 %v1004_v16 }
  0x83   : > { %861 = vmatpush3.bf16.msra.mxu0 %v989_v9  ;;  %892 = vmatprep.subr.bf16.mxu1 %v1005_v17 }
  0x84   : > { %862 = vmatprep.subr.bf16.mxu0 %v990_v11 }
  0x86   : > { %893 = vmatpush3.bf16.msra.mxu1 %v1005_v17 }
  0x87   : > { %863 = vmatpush3.bf16.msra.mxu0 %v990_v11  ;;  %894 = vmatprep.subr.bf16.mxu1 %v1006_v23 }
  0x8a   : > { %865 = vmatmul.mubr.bf16.vlgmr.msra.gmra.mrb[0].mxu0 %v992_v14  ;;  %895 = vmatpush3.bf16.msra.mxu1 %v1006_v23 }
  0x8b   : > { %868 = vmatprep.mubr.bf16.mxu0 %v993_v15 }
  0x92   : > { %869 = vmatmul.mubr.bf16.gmra.mrb[4].mxu0 %v994_v18 }
  0x93   : > { %872 = vmatprep.mubr.bf16.mxu0 %v995_v19 }
  0x9a   : > { %873 = vmatmul.mubr.bf16.gmra.mrb[8].mxu0 %v996_v20 }
  0x9b   : > { %876 = vmatprep.mubr.bf16.mxu0 %v997_v21 }
  0xa2   : > { %877 = vmatmul.mubr.bf16.gmra.mrb[12].mxu0 %v998_v22 }
 0x15d   : > { %v866_v24 = vpop.f32.mrb[0].mxu0 }
 0x15e   : > { %v410_v25 = vpop.f32.mrb[1].mxu0 }
 0x15f   : > { %v867_v26 = vpop.f32.mrb[2].mxu0 }
 0x160   : > { %v474_v27 = vpack.c.bf16 %v867_v26, %v866_v24  ;;  %v413_v28 = vpop.f32.mrb[3].mxu0 }
 0x161   : > { %v473_v29 = vpack.c.bf16 %v413_v28, %v410_v25 }
 0x163   : > { %896 = vmatprep.mubr.bf16.mxu1 %v473_v29 }
 0x164   : > { %897 = vmatmul.mubr.bf16.vlgmr.msra.gmra.mrb[0].mxu1 %v474_v27 }
 0x165   : > { %v870_v30 = vpop.f32.mrb[4].mxu0 }
 0x166   : > { %v426_v31 = vpop.f32.mrb[5].mxu0 }
 0x167   : > { %v871_v32 = vpop.f32.mrb[6].mxu0 }
 0x168   : > { %v476_v33 = vpack.c.bf16 %v871_v32, %v870_v30  ;;  %v429_v34 = vpop.f32.mrb[7].mxu0 }
 0x169   : > { %v475_v35 = vpack.c.bf16 %v429_v34, %v426_v31 }
 0x16b   : > { %900 = vmatprep.mubr.bf16.mxu1 %v475_v35 }
 0x16c   : > { %901 = vmatmul.mubr.bf16.gmra.mrb[4].mxu1 %v476_v33 }
 0x16d   : > { %v874_v36 = vpop.f32.mrb[8].mxu0 }
 0x16e   : > { %v442_v37 = vpop.f32.mrb[9].mxu0 }
 0x16f   : > { %v875_v38 = vpop.f32.mrb[10].mxu0 }
 0x170   : > { %v478_v39 = vpack.c.bf16 %v875_v38, %v874_v36  ;;  %v445_v40 = vpop.f32.mrb[11].mxu0 }
 0x171   : > { %v477_v41 = vpack.c.bf16 %v445_v40, %v442_v37 }
 0x173   : > { %904 = vmatprep.mubr.bf16.mxu1 %v477_v41 }
 0x174   : > { %905 = vmatmul.mubr.bf16.gmra.mrb[8].mxu1 %v478_v39 }
 0x175   : > { %v878_v42 = vpop.f32.mrb[12].mxu0 }
 0x176   : > { %v458_v43 = vpop.f32.mrb[13].mxu0 }
 0x177   : > { %v879_v44 = vpop.f32.mrb[14].mxu0 }
 0x178   : > { %v480_v45 = vpack.c.bf16 %v879_v44, %v878_v42  ;;  %v461_v46 = vpop.f32.mrb[15].mxu0 }
 0x179   : > { %v479_v47 = vpack.c.bf16 %v461_v46, %v458_v43 }
 0x17b   : > { %908 = vmatprep.mubr.bf16.mxu1 %v479_v47 }
 0x17c   : > { %909 = vmatmul.mubr.bf16.gmra.mrb[12].mxu1 %v480_v45 }
 0x237   : > { %v898_v49 = vpop.f32.mrb[0].mxu1 }
 0x238   : > { %v595_v50 = vadd.f32 %v898_v49, %v800_v48  ;;  %v586_v51 = vpop.f32.mrb[1].mxu1 }
 0x239   : > { %v587_v52 = vadd.f32 %v800_v48, %v586_v51  ;;  %v899_v53 = vpop.f32.mrb[2].mxu1 }
 0x23a   : > { %651 = vst [vmem:[%s1405_s12 + $0x10] sm:$0xff] %v595_v50  ;;  %v598_v54 = vadd.f32 %v899_v53, %v800_v48  ;;  %v589_v55 = vpop.f32.mrb[3].mxu1 }
 0x23b   : > { %649 = vst [vmem:[%s1405_s12] sm:$0xff] %v587_v52  ;;  %v590_v56 = vadd.f32 %v800_v48, %v589_v55 }
 0x23c   : > { %652 = vst [vmem:[%s1405_s12 + $0x18] sm:$0xff] %v598_v54 }
 0x23d   : > { %650 = vst [vmem:[%s1405_s12 + $0x8] sm:$0xff] %v590_v56 }
 0x23f   : > { %v902_v57 = vpop.f32.mrb[4].mxu1 }
 0x240   : > { %v611_v58 = vadd.f32 %v902_v57, %v800_v48  ;;  %v602_v59 = vpop.f32.mrb[5].mxu1 }
 0x241   : > { %v603_v60 = vadd.f32 %v800_v48, %v602_v59  ;;  %v903_v61 = vpop.f32.mrb[6].mxu1 }
 0x242   : > { %655 = vst [vmem:[%s1405_s12 + $0x30] sm:$0xff] %v611_v58  ;;  %v614_v62 = vadd.f32 %v903_v61, %v800_v48  ;;  %v605_v63 = vpop.f32.mrb[7].mxu1 }
 0x243   : > { %653 = vst [vmem:[%s1405_s12 + $0x20] sm:$0xff] %v603_v60  ;;  %v606_v0 = vadd.f32 %v800_v48, %v605_v63 }
 0x244   : > { %656 = vst [vmem:[%s1405_s12 + $0x38] sm:$0xff] %v614_v62 }
 0x245   : > { %654 = vst [vmem:[%s1405_s12 + $0x28] sm:$0xff] %v606_v0 }
 0x247   : > { %v906_v1 = vpop.f32.mrb[8].mxu1 }
 0x248   : > { %v627_v2 = vadd.f32 %v906_v1, %v800_v48  ;;  %v618_v3 = vpop.f32.mrb[9].mxu1 }
 0x249   : > { %v619_v4 = vadd.f32 %v800_v48, %v618_v3  ;;  %v907_v5 = vpop.f32.mrb[10].mxu1 }
 0x24a   : > { %659 = vst [vmem:[%s1405_s12 + $0x50] sm:$0xff] %v627_v2  ;;  %v630_v6 = vadd.f32 %v907_v5, %v800_v48  ;;  %v621_v7 = vpop.f32.mrb[11].mxu1 }
 0x24b   : > { %657 = vst [vmem:[%s1405_s12 + $0x40] sm:$0xff] %v619_v4  ;;  %v622_v8 = vadd.f32 %v800_v48, %v621_v7 }
 0x24c   : > { %660 = vst [vmem:[%s1405_s12 + $0x58] sm:$0xff] %v630_v6 }
 0x24d   : > { %658 = vst [vmem:[%s1405_s12 + $0x48] sm:$0xff] %v622_v8 }
 0x24f   : > { %v910_v9 = vpop.f32.mrb[12].mxu1 }
 0x250   : > { %v643_v10 = vadd.f32 %v910_v9, %v800_v48  ;;  %v634_v11 = vpop.f32.mrb[13].mxu1 }
 0x251   : > { %v635_v12 = vadd.f32 %v800_v48, %v634_v11  ;;  %v911_v13 = vpop.f32.mrb[14].mxu1 }
 0x252   : > { %663 = vst [vmem:[%s1405_s12 + $0x70] sm:$0xff] %v643_v10  ;;  %v646_v14 = vadd.f32 %v911_v13, %v800_v48  ;;  %v637_v15 = vpop.f32.mrb[15].mxu1 }
 0x253   : > { %661 = vst [vmem:[%s1405_s12 + $0x60] sm:$0xff] %v635_v12  ;;  %v638_v16 = vadd.f32 %v800_v48, %v637_v15 }
 0x254   : > { %664 = vst [vmem:[%s1405_s12 + $0x78] sm:$0xff] %v646_v14 }
 0x255   : > { %662 = vst [vmem:[%s1405_s12 + $0x68] sm:$0xff] %v638_v16 }
 0x256   : > { %1106 = shalt.err (!%p1103_p1)
}
 0x257   : > { %s1107_s10 = scalar_lea.hbm %s1425_s27, 2048  ;;  %s1111_s21 = scalar_lea.hbm %s1478_s4, 4096 }
 0x258   : > { %p1108_p13 = scmp.ne.s32.totalorder %s1425_s27, %s1107_s10  ;;  %p1112_p4 = scmp.lt.u32.totalorder %s1425_s27, %s1478_s4 }
 0x259   : > { %p1113_p5 = scmp.lt.u32.totalorder %s1111_s21, %s1107_s10  ;;  %p1115_p11 = scmp.lt.u32.totalorder %s1107_s10, %s1425_s27 }
 0x25a   : > { %p1109_p6 = pnand %p1108_p13, %p1492_p0 }
 0x25b   : > { %p1114_p8 = por %p1113_p5, %p1112_p4 }
 0x25c   : > { %p1110_p10 = pneg %p1109_p6 }
 0x25d   : > { %p1116_p2 = por %p1115_p11, %p1114_p8 }
 0x25f   : > { %p1117_p3 = pnand %p1116_p2, %p1110_p10 }
 0x261   : > { %1120 = shalt.err (!%p1117_p3)
}
 0x262   : > { %s1171_s12 = smov 128   ;;  %s1172_s30 = smov 8  }
 0x263   : > { %922 = dma.vmem_to_hbm [thread:$0]  (%p1492_p0), %s1427_s6, 2048, %s1425_s27, %s666_s19, %s1171_s12, %s1171_s12, %s1172_s30  }
 0x264 PF: > { %s694_s25 = sand.u32 1, %s1151_s15   ;;  %p1493_p7 = scmp.ne.s32.totalorder %s1483_s22, 0 }
 0x265   : > { %p1494_p9 = scmp.ge.s32.totalorder %s1163_s18, 2  ;;  %s695_s7 = scalar_lea.sflag [#allocation4], %s694_s25 }
 0x267   : > { %p936_p12 = pnand %p1494_p9, %p1493_p7 }
 0x269   : > { %1146 = dma.done.wait (!%p936_p12), %s695_s7, 2048  }
 0x26a   : > { %1148 = vsyncadd (!%p936_p12), %s695_s7, 4294965248  ;;  %p18_p1 = scmp.ge.s32.totalorder %s1314_s26, 4   ;;  %s1495_s15 = smov %s1155_s16 }
 0x26b   : > { %s1496_s16 = smov %s1159_s17  ;;  %s1497_s17 = smov %s1330_s14 }
 0x26c   : > { %s1498_s18 = smov %s1314_s26  ;;  %20 = sbr.rel (!%p18_p1) target bundleno = 6 (0x6), region = 89 }
 0x273   :  { %700 = vsyncpa [#allocation3], 1 }
 0x274   :  { %702 = vsyncpa [#allocation3 + $0x1], 1 }
 0x275   :  { %703 = vsyncpa [#allocation6], 1 }
 0x276   :  { %704 = vsyncpa [#allocation4], 1 }
 0x277   :  { %706 = vsyncpa [#allocation4 + $0x1], 1 }

</bundles_post_ra>
